<compile_context>
chip_gen: v6e
topology: v6e:2x2x1
jax: 0.10.0
libtpu: 0.0.40
codegen_flags: <defaults>
</compile_context>

<pallas_src>
import numpy as np
import jax
import jax.numpy as jnp
from jax.experimental import pallas as pl
from jax.experimental.pallas import tpu as pltpu


# ----------------------------------------------------------------------------
# Pallas kernel: fused 3x3 conv (pad=1, stride=1, no bias) + BN (folded) + ReLU
# ----------------------------------------------------------------------------
def _conv3x3_bn_relu_kernel(x_ref, w_ref, scale_ref, shift_ref, o_ref, xpad_ref):
    # x_ref:     (1, H, W, Cin)    bf16 unpadded input tile (one batch element)
    # w_ref:     (3, 3*Cin, Cout)  bf16 weights, layout w[ky, kx*Cin + ci, co]
    # scale_ref: (1, Cout)  f32    folded BN scale  (gamma / sqrt(var + eps))
    # shift_ref: (1, Cout)  f32    folded BN shift  (beta - mean * scale)
    # o_ref:     (1, H, W, Cout)
    # xpad_ref:  (H+2, W+2, Cin)   VMEM scratch holding the zero-padded tile
    _, H, W, Cout = o_ref.shape
    Cin = x_ref.shape[-1]

    # Build the 1-pixel zero halo in VMEM (no HBM-level jnp.pad round trip).
    # Re-zeroed every grid step so the kernel stays correct when the batch
    # axis is sharded across TensorCores ("parallel" semantics).
    xpad_ref[...] = jnp.zeros_like(xpad_ref)
    xpad_ref[pl.ds(1, H), pl.ds(1, W), :] = x_ref[0]
    xp = xpad_ref[...]                                          # (H+2, W+2, Cin)

    # 3 wide MXU matmuls (K = 3*Cin) instead of 9 skinny ones (K = Cin):
    # width im2col of each kernel-row strip along the channel (lane) axis.
    acc = jnp.zeros((H * W, Cout), jnp.float32)                 # f32 accumulation
    for ky in range(3):                                         # static unroll
        strip = xp[ky:ky + H]                                   # (H, W+2, Cin)
        patch = jnp.concatenate(
            [strip[:, kx:kx + W, :] for kx in range(3)], axis=-1)   # (H, W, 3*Cin)
        acc = acc + jnp.dot(patch.reshape(H * W, 3 * Cin), w_ref[ky],
                            preferred_element_type=jnp.float32)
    # TODO(synk): for large H*W (real TransUNet stages), add a spatial grid
    # axis with explicit halo handling and a VMEM f32 scratch accumulator to
    # bound vreg pressure; whole-image blocks are fine at these demo shapes.

    y = acc * scale_ref[0] + shift_ref[0]                       # folded BatchNorm
    y = jnp.maximum(y, 0.0)                                     # ReLU
    o_ref[0] = y.reshape(H, W, Cout).astype(o_ref.dtype)


def conv3x3_bn_relu(x_nhwc, w_hwio, scale, shift, *, out_dtype=None):
    """Conv2dReLU(in, out, k=3, pad=1) in NHWC via a fused Pallas kernel."""
    B, H, W, Cin = x_nhwc.shape
    Cout = w_hwio.shape[-1]
    out_dtype = jnp.dtype(out_dtype) if out_dtype is not None else jnp.dtype(jnp.bfloat16)

    x = x_nhwc.astype(jnp.bfloat16)                             # bf16 on the MXU
    w = w_hwio.reshape(3, 3 * Cin, Cout).astype(jnp.bfloat16)   # (ky, kx*Cin+ci, co)
    scale2 = scale.reshape(1, Cout).astype(jnp.float32)
    shift2 = shift.reshape(1, Cout).astype(jnp.float32)

    # Explicit VMEM budget, re-derived per layer and clamped so it also fits
    # v7x's 64 MiB physical VMEM.
    need = (2 * H * W * (Cin + Cout) * 2        # double-buffered in/out tiles (bf16)
            + 9 * Cin * Cout * 2                # weights
            + (H + 2) * (W + 2) * Cin * 2       # halo scratch
            + H * W * Cout * 4)                 # f32 accumulator
    vmem_limit = int(min(64 * 2**20, max(16 * 2**20, 2 * need)))

    return pl.pallas_call(
        _conv3x3_bn_relu_kernel,
        out_shape=jax.ShapeDtypeStruct((B, H, W, Cout), out_dtype),
        grid=(B,),
        in_specs=[
            pl.BlockSpec((1, H, W, Cin), lambda b: (b, 0, 0, 0)),
            pl.BlockSpec((3, 3 * Cin, Cout), lambda b: (0, 0, 0)),
            pl.BlockSpec((1, Cout), lambda b: (0, 0)),
            pl.BlockSpec((1, Cout), lambda b: (0, 0)),
        ],
        out_specs=pl.BlockSpec((1, H, W, Cout), lambda b: (b, 0, 0, 0)),
        scratch_shapes=[pltpu.VMEM((H + 2, W + 2, Cin), jnp.bfloat16)],
        compiler_params=pltpu.CompilerParams(
            dimension_semantics=("parallel",),   # v7x: shard batch over both TCs
            vmem_limit_bytes=vmem_limit),
    )(x, w, scale2, shift2)


# ----------------------------------------------------------------------------
# Bilinear 2x upsampling, align_corners=True (== nn.UpsamplingBilinear2d)
# ----------------------------------------------------------------------------
def _bilinear_matrix(n_in, n_out):
    if n_in == 1:
        return np.ones((n_out, 1), np.float32)
    src = np.arange(n_out) * (n_in - 1) / (n_out - 1)
    i0 = np.floor(src).astype(np.int64)
    i1 = np.minimum(i0 + 1, n_in - 1)
    frac = (src - i0).astype(np.float32)
    A = np.zeros((n_out, n_in), np.float32)
    A[np.arange(n_out), i0] += 1.0 - frac
    A[np.arange(n_out), i1] += frac
    return A


def upsample2x_bilinear(x_nhwc):
    # TODO(synk): fuse this 2x bilinear upsample into the following conv kernel
    # to avoid writing/reading the 4x larger intermediate through HBM; kept as
    # XLA glue here (bf16 output halves its HBM traffic vs the f32 version).
    B, H, W, C = x_nhwc.shape
    Ah = jnp.asarray(_bilinear_matrix(H, 2 * H))
    Aw = jnp.asarray(_bilinear_matrix(W, 2 * W))
    y = jnp.einsum('oh,bhwc->bowc', Ah, x_nhwc)
    y = jnp.einsum('pw,bowc->bopc', Aw, y)
    return y.astype(x_nhwc.dtype)


# ----------------------------------------------------------------------------
# Deterministic parameter construction (synthetic weights).
# BatchNorm folded in inference mode: running_mean=0, running_var=1, eps=1e-5.
# ----------------------------------------------------------------------------
def make_conv_bn_params(key, cin, cout):
    kw, kg, kb = jax.random.split(key, 3)
    w = jax.random.normal(kw, (3, 3, cin, cout), jnp.float32) / np.sqrt(9.0 * cin)
    gamma = 1.0 + 0.1 * jax.random.normal(kg, (cout,), jnp.float32)
    beta = 0.1 * jax.random.normal(kb, (cout,), jnp.float32)
    running_mean = jnp.zeros((cout,), jnp.float32)
    running_var = jnp.ones((cout,), jnp.float32)
    eps = 1e-5
    scale = gamma / jnp.sqrt(running_var + eps)
    shift = beta - running_mean * scale
    return (w, scale, shift)


def make_decoder_cup_params(key, hidden_size, decoder_channels, head_channels=512):
    keys = jax.random.split(key, 1 + 2 * len(decoder_channels))
    params = {"conv_more": make_conv_bn_params(keys[0], hidden_size, head_channels)}
    in_channels = [head_channels] + list(decoder_channels[:-1])
    blocks = []
    for i, (cin, cout) in enumerate(zip(in_channels, decoder_channels)):
        p1 = make_conv_bn_params(keys[1 + 2 * i], cin, cout)
        p2 = make_conv_bn_params(keys[2 + 2 * i], cout, cout)
        blocks.append((p1, p2))
    params["blocks"] = blocks
    return params


# ----------------------------------------------------------------------------
# DecoderCup forward
# ----------------------------------------------------------------------------
def decoder_cup_forward(hidden_states, params):
    """hidden_states: (B, n_patch, hidden). Returns NCHW f32 like the PyTorch module."""
    B, n_patch, hidden = hidden_states.shape
    h = w = int(np.sqrt(n_patch))
    # PyTorch: permute(0,2,1).view(B, hidden, h, w)  ==  this NHWC reshape:
    #   x_nchw[b, c, i, j] = hidden_states[b, i*w + j, c]
    x = hidden_states.reshape(B, h, w, hidden)

    # conv_more
    x = conv3x3_bn_relu(x, *params["conv_more"])

    # decoder blocks: upsample x2 -> Conv2dReLU -> Conv2dReLU   (features=None path)
    for (p1, p2) in params["blocks"]:
        x = upsample2x_bilinear(x)
        x = conv3x3_bn_relu(x, *p1)
        x = conv3x3_bn_relu(x, *p2)

    # TODO(synk): fold this NHWC->NCHW transpose into the last conv's store
    # (or return NHWC if the consumer allows) to save one HBM round trip.
    return jnp.transpose(x, (0, 3, 1, 2)).astype(jnp.float32)


if __name__ == "__main__":
    # Small config consistent with the module:
    #   hidden_size=32, decoder_channels=(64, 32), head_channels=512 (hardcoded),
    #   B=2, n_patch=16 -> 4x4 token grid -> output (B, 32, 16, 16) NCHW.
    hidden_size = 32
    decoder_channels = (64, 32)
    B, n_patch = 2, 16

    key = jax.random.PRNGKey(0)
    k_in, k_par = jax.random.split(key)
    hidden_states = jax.random.normal(k_in, (B, n_patch, hidden_size), jnp.float32)
    params = make_decoder_cup_params(k_par, hidden_size, decoder_channels)

    out = decoder_cup_forward(hidden_states, params)
    out = jax.block_until_ready(out)

    h = int(np.sqrt(n_patch))
    expected_shape = (B, decoder_channels[-1], h * (2 ** len(decoder_channels)),
                      h * (2 ** len(decoder_channels)))
    assert out.shape == expected_shape, (out.shape, expected_shape)
    assert bool(jnp.all(jnp.isfinite(out)))
    print("KERNEL_OK")
</pallas_src>

<mosaic_0001>
module attributes {stable_mosaic.version = 11 : i64} {
  func.func @_conv3x3_bn_relu_kernel(%arg0: i32, %arg1: memref<1x4x4x32xbf16, #tpu.memory_space<vmem>>, %arg2: memref<3x96x512xbf16, #tpu.memory_space<vmem>>, %arg3: memref<1x512xf32, #tpu.memory_space<vmem>>, %arg4: memref<1x512xf32, #tpu.memory_space<vmem>>, %arg5: memref<1x4x4x512xbf16, #tpu.memory_space<vmem>>, %arg6: memref<6x6x32xbf16, #tpu.memory_space<vmem>>) attributes {dimension_semantics = [#tpu.dimension_semantics<parallel>], iteration_bounds = array<i64: 2>, scalar_prefetch = 0 : i64, scratch_operands = 1 : i64, tpu.core_type = #tpu.core_type<tc>, window_params = [{transform_indices = @transform_0, window_bounds = array<i64: 1, 4, 4, 32>}, {pipeline_mode = #tpu.pipeline_mode<synchronous>, transform_indices = @transform_1, window_bounds = array<i64: 3, 96, 512>}, {pipeline_mode = #tpu.pipeline_mode<synchronous>, transform_indices = @transform_2, window_bounds = array<i64: 1, 512>}, {pipeline_mode = #tpu.pipeline_mode<synchronous>, transform_indices = @transform_3, window_bounds = array<i64: 1, 512>}, {transform_indices = @transform_4, window_bounds = array<i64: 1, 4, 4, 512>}]} {
    %cst = arith.constant 0.000000e+00 : bf16
    %0 = vector.broadcast %cst : bf16 to vector<6x6x32xbf16>
    %c0 = arith.constant 0 : index
    %c0_0 = arith.constant 0 : index
    %c0_1 = arith.constant 0 : index
    %1 = vector.load %arg6[%c0, %c0_0, %c0_1] : memref<6x6x32xbf16, #tpu.memory_space<vmem>>, vector<6x6x32xbf16>
    tpu.vector_store %arg6[%c0, %c0_0, %c0_1], %0 {strides = array<i32>} : memref<6x6x32xbf16, #tpu.memory_space<vmem>>, vector<6x6x32xbf16>,
    %c0_2 = arith.constant 0 : index
    %c0_3 = arith.constant 0 : index
    %c0_4 = arith.constant 0 : index
    %c0_5 = arith.constant 0 : index
    %2 = vector.load %arg1[%c0_2, %c0_3, %c0_4, %c0_5] : memref<1x4x4x32xbf16, #tpu.memory_space<vmem>>, vector<1x4x4x32xbf16>
    %3 = vector.shape_cast %2 : vector<1x4x4x32xbf16> to vector<4x4x32xbf16>
    %c1 = arith.constant 1 : index
    %c1_6 = arith.constant 1 : index
    %c0_7 = arith.constant 0 : index
    %4 = vector.load %arg6[%c1, %c1_6, %c0_7] : memref<6x6x32xbf16, #tpu.memory_space<vmem>>, vector<4x4x32xbf16>
    tpu.vector_store %arg6[%c1, %c1_6, %c0_7], %3 {strides = array<i32>} : memref<6x6x32xbf16, #tpu.memory_space<vmem>>, vector<4x4x32xbf16>,
    %c0_8 = arith.constant 0 : index
    %c0_9 = arith.constant 0 : index
    %c0_10 = arith.constant 0 : index
    %5 = vector.load %arg6[%c0_8, %c0_9, %c0_10] : memref<6x6x32xbf16, #tpu.memory_space<vmem>>, vector<6x6x32xbf16>
    %cst_11 = arith.constant 0.000000e+00 : f32
    %6 = vector.broadcast %cst_11 : f32 to vector<16x512xf32>
    %7 = vector.extract_strided_slice %5 {offsets = [0, 0, 0], sizes = [4, 6, 32], strides = [1, 1, 1]} : vector<6x6x32xbf16> to vector<4x6x32xbf16>
    %8 = vector.extract_strided_slice %7 {offsets = [0, 0, 0], sizes = [4, 4, 32], strides = [1, 1, 1]} : vector<4x6x32xbf16> to vector<4x4x32xbf16>
    %9 = vector.extract_strided_slice %7 {offsets = [0, 1, 0], sizes = [4, 4, 32], strides = [1, 1, 1]} : vector<4x6x32xbf16> to vector<4x4x32xbf16>
    %10 = vector.extract_strided_slice %7 {offsets = [0, 2, 0], sizes = [4, 4, 32], strides = [1, 1, 1]} : vector<4x6x32xbf16> to vector<4x4x32xbf16>
    %11 = tpu.concatenate %8, %9, %10 in 2 : vector<4x4x32xbf16>, vector<4x4x32xbf16>, vector<4x4x32xbf16> -> vector<4x4x96xbf16>
    %12 = vector.shape_cast %11 : vector<4x4x96xbf16> to vector<16x96xbf16>
    %c0_12 = arith.constant 0 : index
    %c0_13 = arith.constant 0 : index
    %c0_14 = arith.constant 0 : index
    %13 = vector.load %arg2[%c0_12, %c0_13, %c0_14] : memref<3x96x512xbf16, #tpu.memory_space<vmem>>, vector<1x96x512xbf16>
    %14 = vector.shape_cast %13 : vector<1x96x512xbf16> to vector<96x512xbf16>
    %cst_15 = arith.constant dense<0.000000e+00> : vector<16x512xf32>
    %15 = tpu.matmul %12, %14, %cst_15 {dimension_numbers = #tpu.dot_dimension_numbers<[1], [0], [0], [1], [0, 0, 1, 1], [], []>} : vector<16x96xbf16>, vector<96x512xbf16>, vector<16x512xf32> -> vector<16x512xf32>
    %16 = arith.addf %6, %15 : vector<16x512xf32>
    %17 = vector.extract_strided_slice %5 {offsets = [1, 0, 0], sizes = [4, 6, 32], strides = [1, 1, 1]} : vector<6x6x32xbf16> to vector<4x6x32xbf16>
    %18 = vector.extract_strided_slice %17 {offsets = [0, 0, 0], sizes = [4, 4, 32], strides = [1, 1, 1]} : vector<4x6x32xbf16> to vector<4x4x32xbf16>
    %19 = vector.extract_strided_slice %17 {offsets = [0, 1, 0], sizes = [4, 4, 32], strides = [1, 1, 1]} : vector<4x6x32xbf16> to vector<4x4x32xbf16>
    %20 = vector.extract_strided_slice %17 {offsets = [0, 2, 0], sizes = [4, 4, 32], strides = [1, 1, 1]} : vector<4x6x32xbf16> to vector<4x4x32xbf16>
    %21 = tpu.concatenate %18, %19, %20 in 2 : vector<4x4x32xbf16>, vector<4x4x32xbf16>, vector<4x4x32xbf16> -> vector<4x4x96xbf16>
    %22 = vector.shape_cast %21 : vector<4x4x96xbf16> to vector<16x96xbf16>
    %c1_16 = arith.constant 1 : index
    %c0_17 = arith.constant 0 : index
    %c0_18 = arith.constant 0 : index
    %23 = vector.load %arg2[%c1_16, %c0_17, %c0_18] : memref<3x96x512xbf16, #tpu.memory_space<vmem>>, vector<1x96x512xbf16>
    %24 = vector.shape_cast %23 : vector<1x96x512xbf16> to vector<96x512xbf16>
    %cst_19 = arith.constant dense<0.000000e+00> : vector<16x512xf32>
    %25 = tpu.matmul %22, %24, %cst_19 {dimension_numbers = #tpu.dot_dimension_numbers<[1], [0], [0], [1], [0, 0, 1, 1], [], []>} : vector<16x96xbf16>, vector<96x512xbf16>, vector<16x512xf32> -> vector<16x512xf32>
    %26 = arith.addf %16, %25 : vector<16x512xf32>
    %27 = vector.extract_strided_slice %5 {offsets = [2, 0, 0], sizes = [4, 6, 32], strides = [1, 1, 1]} : vector<6x6x32xbf16> to vector<4x6x32xbf16>
    %28 = vector.extract_strided_slice %27 {offsets = [0, 0, 0], sizes = [4, 4, 32], strides = [1, 1, 1]} : vector<4x6x32xbf16> to vector<4x4x32xbf16>
    %29 = vector.extract_strided_slice %27 {offsets = [0, 1, 0], sizes = [4, 4, 32], strides = [1, 1, 1]} : vector<4x6x32xbf16> to vector<4x4x32xbf16>
    %30 = vector.extract_strided_slice %27 {offsets = [0, 2, 0], sizes = [4, 4, 32], strides = [1, 1, 1]} : vector<4x6x32xbf16> to vector<4x4x32xbf16>
    %31 = tpu.concatenate %28, %29, %30 in 2 : vector<4x4x32xbf16>, vector<4x4x32xbf16>, vector<4x4x32xbf16> -> vector<4x4x96xbf16>
    %32 = vector.shape_cast %31 : vector<4x4x96xbf16> to vector<16x96xbf16>
    %c2 = arith.constant 2 : index
    %c0_20 = arith.constant 0 : index
    %c0_21 = arith.constant 0 : index
    %33 = vector.load %arg2[%c2, %c0_20, %c0_21] : memref<3x96x512xbf16, #tpu.memory_space<vmem>>, vector<1x96x512xbf16>
    %34 = vector.shape_cast %33 : vector<1x96x512xbf16> to vector<96x512xbf16>
    %cst_22 = arith.constant dense<0.000000e+00> : vector<16x512xf32>
    %35 = tpu.matmul %32, %34, %cst_22 {dimension_numbers = #tpu.dot_dimension_numbers<[1], [0], [0], [1], [0, 0, 1, 1], [], []>} : vector<16x96xbf16>, vector<96x512xbf16>, vector<16x512xf32> -> vector<16x512xf32>
    %36 = arith.addf %26, %35 : vector<16x512xf32>
    %c0_23 = arith.constant 0 : index
    %c0_24 = arith.constant 0 : index
    %37 = vector.load %arg3[%c0_23, %c0_24] : memref<1x512xf32, #tpu.memory_space<vmem>>, vector<1x512xf32>
    %38 = vector.shape_cast %37 : vector<1x512xf32> to vector<512xf32>
    %39 = vector.shape_cast %38 : vector<512xf32> to vector<1x512xf32>
    %40 = vector.broadcast %39 : vector<1x512xf32> to vector<16x512xf32>
    %41 = arith.mulf %36, %40 : vector<16x512xf32>
    %c0_25 = arith.constant 0 : index
    %c0_26 = arith.constant 0 : index
    %42 = vector.load %arg4[%c0_25, %c0_26] : memref<1x512xf32, #tpu.memory_space<vmem>>, vector<1x512xf32>
    %43 = vector.shape_cast %42 : vector<1x512xf32> to vector<512xf32>
    %44 = vector.shape_cast %43 : vector<512xf32> to vector<1x512xf32>
    %45 = vector.broadcast %44 : vector<1x512xf32> to vector<16x512xf32>
    %46 = arith.addf %41, %45 : vector<16x512xf32>
    %cst_27 = arith.constant 0.000000e+00 : f32
    %47 = vector.broadcast %cst_27 : f32 to vector<16x512xf32>
    %48 = arith.maximumf %46, %47 : vector<16x512xf32>
    %49 = vector.shape_cast %48 : vector<16x512xf32> to vector<4x4x512xf32>
    %50 = arith.truncf %49 : vector<4x4x512xf32> to vector<4x4x512xbf16>
    %c0_28 = arith.constant 0 : index
    %c0_29 = arith.constant 0 : index
    %c0_30 = arith.constant 0 : index
    %c0_31 = arith.constant 0 : index
    %51 = vector.load %arg5[%c0_28, %c0_29, %c0_30, %c0_31] : memref<1x4x4x512xbf16, #tpu.memory_space<vmem>>, vector<1x4x4x512xbf16>
    %52 = vector.shape_cast %51 : vector<1x4x4x512xbf16> to vector<4x4x512xbf16>
    %53 = vector.shape_cast %50 : vector<4x4x512xbf16> to vector<1x4x4x512xbf16>
    tpu.vector_store %arg5[%c0_28, %c0_29, %c0_30, %c0_31], %53 {strides = array<i32>} : memref<1x4x4x512xbf16, #tpu.memory_space<vmem>>, vector<1x4x4x512xbf16>,
    return
  }
  func.func @transform_0(%arg0: i32) -> (i32, i32, i32, i32) {
    %c0_i32 = arith.constant 0 : i32
    %c0_i32_0 = arith.constant 0 : i32
    %c0_i32_1 = arith.constant 0 : i32
    %c0_i32_2 = arith.constant 0 : i32
    return %arg0, %c0_i32, %c0_i32_0, %c0_i32_1 : i32, i32, i32, i32
  }
  func.func @transform_1(%arg0: i32) -> (i32, i32, i32) {
    %c0_i32 = arith.constant 0 : i32
    %c0_i32_0 = arith.constant 0 : i32
    %c0_i32_1 = arith.constant 0 : i32
    %c0_i32_2 = arith.constant 0 : i32
    return %c0_i32, %c0_i32_0, %c0_i32_1 : i32, i32, i32
  }
  func.func @transform_2(%arg0: i32) -> (i32, i32) {
    %c0_i32 = arith.constant 0 : i32
    %c0_i32_0 = arith.constant 0 : i32
    %c0_i32_1 = arith.constant 0 : i32
    return %c0_i32, %c0_i32_0 : i32, i32
  }
  func.func @transform_3(%arg0: i32) -> (i32, i32) {
    %c0_i32 = arith.constant 0 : i32
    %c0_i32_0 = arith.constant 0 : i32
    %c0_i32_1 = arith.constant 0 : i32
    return %c0_i32, %c0_i32_0 : i32, i32
  }
  func.func @transform_4(%arg0: i32) -> (i32, i32, i32, i32) {
    %c0_i32 = arith.constant 0 : i32
    %c0_i32_0 = arith.constant 0 : i32
    %c0_i32_1 = arith.constant 0 : i32
    %c0_i32_2 = arith.constant 0 : i32
    return %arg0, %c0_i32, %c0_i32_0, %c0_i32_1 : i32, i32, i32, i32
  }
}

</mosaic_0001>

<bundles_post_ra>
// kernel: tpu_custom_call.1
= control target key start
LH: loop header
LB: loop body
LE: loop exit
PB: predicated region body
PF: predicated region fallthrough
CT: control target
= control target key end

     0   :  { %9 = vsyncpa [#allocation4], 0  ;;  %s2371_s0 = inlined_call_operand.hbm [shape: bf16[2,4,4,32], index: 0, kind: input, shape index: {}]   ;;  %s2372_s1 = inlined_call_operand.hbm [shape: bf16[3,96,512], index: 1, kind: input, shape index: {}]   ;;  %s2373_s2 = inlined_call_operand.hbm [shape: f32[1,512], index: 2, kind: input, shape index: {}]   ;;  %s2374_s3 = inlined_call_operand.vmem [shape: f32[1,512], index: 3, kind: input, shape index: {}]   ;;  %s2375_s4 = inlined_call_operand.hbm [shape: bf16[2,4,4,512], index: 4, kind: output, shape index: {}]  }
   0x1   :  { %11 = vsyncpa [#allocation4 + $0x1], 0 }
   0x2   :  { %12 = vsyncpa [#allocation7], 0 }
   0x3   :  { %13 = vsyncpa [#allocation5], 0 }
   0x4   :  { %15 = vsyncpa [#allocation5 + $0x1], 0  ;;  %s2048_s15 = smov 0   ;;  %s2050_s16 = smov 0  }
   0x5   :  { %s2052_s17 = smov 0   ;;  %s2054_s18 = smov 0  }
   0x6 LB: > { %s2069_s19 = sadd.s32 4294967295, %s2007_s18   ;;  %s1544_s20 = sadd.s32 4294967294, %s2007_s18   ;;  %s2007_s18 = sphi %s2054_s18, %s2399_s18   ;;  %s2003_s17 = sphi %s2052_s17, %s2398_s17   ;;  %s1999_s16 = sphi %s2050_s16, %s2397_s16   ;;  %s1995_s15 = sphi %s2048_s15, %s2396_s15  }
   0x7   : > { %p41_p0 = scmp.ne.s32.totalorder %s1999_s16, %s1995_s15  ;;  %p2376_p1 = scmp.eq.s32.totalorder %s2069_s19, 0 }
   0x8   : > { %p134_p3 = scmp.eq.s32.totalorder %s1544_s20, 1  ;;  %p1545_p5 = scmp.ge.s32.totalorder %s2007_s18, 1 }
   0x9   : > { %p2078_p4 = por %p2376_p1, %p41_p0  ;;  %p141_p7 = scmp.lt.s32.totalorder %s2007_s18, 3 }
   0xa   : > { %p2083_p6 = por %p134_p3, %p41_p0  ;;  %s2009_s24 = smov [#allocation6]  }
   0xb   : > { %s2380_s21 = scalar_select %p2078_p4, 1, 0 }
   0xc   : > { %s2381_s22 = scalar_select %p2083_p6, 1, 0 }
   0xd   : > { %p2088_p8 = pnand %p1545_p5, %p141_p7  ;;  %s153_s25 = sshll.u32 %s2009_s24, 4  ;;  %s154_s25 = int_to_ptr.vmem [resolvable:$true] %s153_s25 }
   0xe   : > { %s2010_s27 = smov [#allocation8]   ;;  %s1870_s29 = scalar_lea.vmem %s154_s25, 9216 }
   0xf   : > { %s2382_s23 = scalar_select %p2088_p8, 1, 0 }
  0x10   : > { %p1680_p9 = pneg %p2088_p8  ;;  %s167_s28 = sshll.u32 %s2010_s27, 4  ;;  %s168_s28 = int_to_ptr.vmem [resolvable:$true] %s167_s28 }
  0x11   : > { %p1871_p13 = scmp.ne.s32.totalorder %s154_s25, %s1870_s29  ;;  %p1878_p5 = scmp.lt.s32.totalorder %s154_s25, %s154_s25 }
  0x12   : > { %p2097_p11 = pnand %p1680_p9, %p2376_p1  ;;  %p1879_p7 = scmp.lt.s32.totalorder %s1870_s29, %s1870_s29 }
  0x14   : > { %p1861_p12 = pneg %p2097_p11  ;;  %p1880_p10 = por %p1879_p7, %p1878_p5 }
  0x16   : > { %p1873_p0 = pnand %p1871_p13, %p1861_p12 }
  0x18   : > { %p1874_p3 = pneg %p1873_p0 }
  0x1a   : > { %p1881_p9 = pnand %p1880_p10, %p1874_p3 }
  0x1c   : > { %1884 = shalt.err (!%p1881_p9)
}
  0x1d   : > { %s2011_s30 = smov 256   ;;  %s2012_s5 = smov 16  }
  0x1e   : > { %1683 = dma.hbm_to_vmem [thread:$0]  (!%p2097_p11), %s2372_s1, 9216, %s154_s25, [#allocation7], %s2011_s30, %s2011_s30, %s2012_s5  }
  0x1f   : > { %s1896_s8 = scalar_lea.vmem %s168_s28, 64  ;;  %p1904_p2 = scmp.lt.s32.totalorder %s168_s28, %s168_s28 }
  0x20   : > { %p1897_p1 = scmp.ne.s32.totalorder %s168_s28, %s1896_s8  ;;  %p1905_p6 = scmp.lt.s32.totalorder %s1896_s8, %s1896_s8 }
  0x22   : > { %p1899_p13 = pnand %p1897_p1, %p1861_p12  ;;  %p1906_p5 = por %p1905_p6, %p1904_p2 }
  0x24   : > { %p1900_p0 = pneg %p1899_p13 }
  0x26   : > { %p1907_p10 = pnand %p1906_p5, %p1900_p0 }
  0x28   : > { %1910 = shalt.err (!%p1907_p10)
}
  0x29   : > { %1686 = dma.hbm_to_vmem [thread:$0]  (!%p2097_p11), %s2373_s2, 64, %s168_s28, [#allocation7]  }
  0x2a   : > { %s2120_s11 = sadd.s32 1, %s2007_s18   ;;  %s28_s12 = sadd.s32 1, %s2003_s17 }
  0x2b   : > { %s25_s13 = ssub.s32 %s2007_s18, %s2120_s11  ;;  %p35_p1 = scmp.ne.s32.totalorder %s2003_s17, %s1999_s16 }
  0x2c   : > { %p26_p2 = scmp.eq.s32.totalorder %s25_s13, 0  ;;  %p36_p6 = scmp.eq.s32.totalorder %s2007_s18, 0 }
  0x2d   : > { %p2384_p12 = scmp.eq.s32.totalorder %s2069_s19, 1  ;;  %p1697_p7 = scmp.lt.s32.totalorder %s2007_s18, 2 }
  0x2e   : > { %s2136_s20 = scalar_select %p26_p2, %s2003_s17, %s28_s12  }
  0x2f   : > { %p2130_p3 = por %p2384_p12, %p35_p1  ;;  %p37_p9 = por %p36_p6, %p35_p1 }
  0x30   : > { %s181_s24 = sand.u32 1, %s2003_s17   ;;  %s1666_s26 = sshll.u32 %s2007_s18, 7 }
  0x31   : > { %s2385_s14 = scalar_select %p2130_p3, 1, 0 }
  0x32   : > { %s1549_s25 = sshll.u32 %s181_s24, 3  ;;  %s2143_s29 = scalar_lea.hbm %s2371_s0, %s1666_s26 }
  0x33   : > { %s185_s30 = scalar_lea.vmem [#allocation3], %s1549_s25  ;;  %p2147_p11 = pnand %p1697_p7, %p37_p9 }
  0x34   : > { %s192_s5 = sshll.u32 %s185_s30, 4  ;;  %s2151_s7 = scalar_lea.sflag [#allocation4], %s181_s24  ;;  %s2145_s5 = int_to_ptr.vmem [resolvable:$true] %s192_s5 }
  0x35   : > { %s1911_s8 = scalar_lea.hbm %s2143_s29, 128  ;;  %p1913_p0 = pneg %p2147_p11 }
  0x36   : > { %p1912_p13 = scmp.ne.s32.totalorder %s2143_s29, %s1911_s8  ;;  %s1916_s12 = scalar_lea.hbm %s2371_s0, 256 }
  0x37   : > { %p1917_p1 = scmp.lt.s32.totalorder %s2143_s29, %s2371_s0  ;;  %p1918_p2 = scmp.lt.s32.totalorder %s1916_s12, %s1911_s8 }
  0x38   : > { %p1914_p5 = pnand %p1913_p0, %p1912_p13 }
  0x39   : > { %p1919_p6 = por %p1918_p2, %p1917_p1 }
  0x3a   : > { %p1915_p10 = pneg %p1914_p5 }
  0x3c   : > { %p1920_p12 = pnand %p1919_p6, %p1915_p10 }
  0x3e   : > { %1923 = shalt.err (!%p1920_p12)
}
  0x3f   : > { %s1924_s24 = scalar_lea.vmem %s2145_s5, 128  ;;  %s2013_s26 = smov [#allocation3]  }
  0x40   : > { %p1925_p7 = scmp.ne.s32.totalorder %s2145_s5, %s1924_s24  ;;  %s1929_s27 = sshll.u32 %s2013_s26, 4  ;;  %s1930_s27 = int_to_ptr.vmem [resolvable:$false] %s1929_s27 }
  0x41   : > { %s1931_s28 = scalar_lea.vmem %s1930_s27, 256  ;;  %p1932_p5 = scmp.lt.s32.totalorder %s2145_s5, %s1930_s27 }
  0x42   : > { %p1927_p9 = pnand %p1925_p7, %p1913_p0  ;;  %p1933_p3 = scmp.lt.s32.totalorder %s1931_s28, %s1924_s24 }
  0x44   : > { %p1928_p13 = pneg %p1927_p9  ;;  %p1934_p4 = por %p1933_p3, %p1932_p5 }
  0x46   : > { %p1935_p8 = pnand %p1934_p4, %p1928_p13 }
  0x48   : > { %1938 = shalt.err (!%p1935_p8)
}
  0x49   : > { %s2014_s30 = smov 32   ;;  %s2015_s8 = smov 2  }
  0x4a   : > { %1690 = dma.hbm_to_vmem [thread:$0]  (!%p2147_p11), %s2143_s29, 128, %s2145_s5, %s2151_s7, %s2014_s30, %s2014_s30, %s2015_s8  }
  0x4b   : > { %p2387_p0 = scmp.ne.s32.totalorder %s2382_s23, 0 }
  0x4c   : > { %s2175_s9 = sand.u32 (!%p2387_p0), 1, %s1999_s16   ;;  %p2388_p4 = scmp.ne.s32.totalorder (!%p2387_p0), %s2380_s21, 0 }
  0x4d   : > { %204 = sbr.rel (%p2387_p0) target bundleno = 526 (0x20e), region = 36  ;;  %s1553_s10 = sshll.u32 (!%p2387_p0), %s2175_s9, 3 }
  0x4e   : > { %s207_s12 = scalar_lea.sflag (!%p2387_p0), [#allocation4], %s2175_s9  ;;  %s2179_s13 = scalar_lea.vmem (!%p2387_p0), [#allocation3], %s1553_s10 }
  0x52   : > { %1982 = dma.done.wait (%p2388_p4), %s207_s12, 128  }
  0x53   : > { %1984 = vsyncadd (%p2388_p4), %s207_s12, 4294967168  ;;  %p2389_p8 = scmp.eq.s32.totalorder %s2069_s19, 0 }
  0x55   : > { %1986 = dma.done.wait (%p2389_p8), [#allocation7], 9280   ;;  %p2390_p3 = pmov %p2389_p8 }
  0x56   : > { %vm244_vm0 = vcmask 256000   ;;  %v2016_v0 = vmov 0   ;;  %v1558_v1 = vld.sshfl [vmem:[%s2179_s13 + $0x2] sm:$0x3 pattern:$0x76325410] }
  0x57   : > { %1988 = vsyncadd (%p2390_p3), [#allocation7], 4294958016  ;;  %247 = vst.msk [vmem:[#allocation2 + $0x8] sm:$0x7] %vm244_vm0, %v2016_v0  ;;  %669 = vmatprep.mubr.bf16.mxu0 %v2016_v0  ;;  %712 = vmatprep.mubr.bf16.mxu1 %v2016_v0  ;;  %v295_v2 = vshrl.u32 %v1558_v1, 16  ;;  %v298_v3 = vshll.u32 %v1558_v1, 16 }
  0x58   : > { %245 = vst.msk [vmem:[#allocation2] sm:$0x7] %vm244_vm0, %v2016_v0  ;;  %246 = vst.msk [vmem:[#allocation2 + $0x4] sm:$0x7] %vm244_vm0, %v2016_v0  ;;  %vm321_vm1 = vsmask.f32 2306 }
  0x59   : > { %248 = vst.msk [vmem:[#allocation2 + $0xc] sm:$0x7] %vm244_vm0, %v2016_v0  ;;  %249 = vst.msk [vmem:[#allocation2 + $0x10] sm:$0x7] %vm244_vm0, %v2016_v0  ;;  %v297_v5 = vrot.slane %v295_v2, 7  ;;  %s2017_s21 = smov 64  }
  0x5a   : > { %250 = vst.msk [vmem:[#allocation2 + $0x14] sm:$0x7] %vm244_vm0, %v2016_v0  ;;  %v1557_v4 = vld.sshfl [vmem:[%s2179_s13] sm:$0x3 pattern:$0x76325410]  ;;  %vm2206_vm2 = vmand %vm244_vm0, %vm321_vm1 }
  0x5b   : > { %v288_v6 = vshrl.u32 %v1557_v4, 16  ;;  %v291_v7 = vshll.u32 %v1557_v4, 16  ;;  %v1559_v10 = vld.sshfl [vmem:[%s2179_s13 + $0x4] sm:$0x3 pattern:$0x76325410]  ;;  %v300_v11 = vor.u32 %v298_v3, %v297_v5 }
  0x5c   : > { %v302_v14 = vshrl.u32 %v1559_v10, 16  ;;  %v305_v15 = vshll.u32 %v1559_v10, 16  ;;  %v1560_v17 = vld.sshfl [vmem:[%s2179_s13 + $0x6] sm:$0x3 pattern:$0x76325410] }
  0x5d   : > { %v290_v12 = vrot.slane %v288_v6, 7  ;;  %v1751_v18 = vld [vmem:[#allocation6 + $0x164] ss:$16 sps:$4 sm:$0xff]   ;;  %v309_v22 = vshrl.u32 %v1560_v17, 16  ;;  %v1753_v23 = vld [vmem:[#allocation6 + $0x16c] ss:$16 sps:$4 sm:$0xff]  }
  0x5e   : > { %v326_v9 = vld [vmem:[#allocation2 + $0x8] sm:$0x7]  ;;  %v304_v21 = vrot.slane %v302_v14, 7  ;;  %v312_v25 = vshll.u32 %v1560_v17, 16  ;;  %641 = vmatprep.subr.bf16.mxu0 %v1751_v18  ;;  %v1756_v27 = vld [vmem:[#allocation6 + $0x168] ss:$16 sps:$4 sm:$0xff]   ;;  %684 = vmatprep.subr.bf16.mxu1 %v1753_v23 }
  0x5f   : > { %v323_v13 = vld [vmem:[#allocation2 + $0x4] sm:$0x7]  ;;  %v327_v19 = vsel %vm2206_vm2, %v300_v11, %v326_v9  ;;  %v293_v20 = vor.u32 %v291_v7, %v290_v12  ;;  %v1755_v24 = vld [vmem:[#allocation6 + $0x160] ss:$16 sps:$4 sm:$0xff]   ;;  %v311_v30 = vrot.slane %v309_v22, 7  ;;  %685 = vmatpush1.bf16.msra.mxu1 %v1756_v27  ;;  %s2018_s23 = smov 32  }
  0x60   : > { %v329_v16 = vld [vmem:[#allocation2 + $0xc] sm:$0x7]  ;;  %328 = vst [vmem:[#allocation2 + $0x8] sm:$0x7] %v327_v19  ;;  %v332_v26 = vld [vmem:[#allocation2 + $0x10] sm:$0x7]  ;;  %v307_v29 = vor.u32 %v305_v15, %v304_v21  ;;  %642 = vmatpush1.bf16.msra.mxu0 %v1755_v24 }
  0x61   : > { %v324_v28 = vsel %vm2206_vm2, %v293_v20, %v323_v13  ;;  %v1757_v31 = vld [vmem:[#allocation6 + $0x144] ss:$16 sps:$4 sm:$0xff]   ;;  %v314_v33 = vor.u32 %v312_v25, %v311_v30  ;;  %v1759_v34 = vld [vmem:[#allocation6 + $0x14c] ss:$16 sps:$4 sm:$0xff]   ;;  %v1761_v35 = vld [vmem:[#allocation6 + $0x140] ss:$16 sps:$4 sm:$0xff]  }
  0x62   : > { %325 = vst [vmem:[#allocation2 + $0x4] sm:$0x7] %v324_v28  ;;  %v330_v32 = vsel %vm2206_vm2, %v307_v29, %v329_v16  ;;  %643 = vmatprep.subr.bf16.mxu0 %v1757_v31  ;;  %v1762_v36 = vld [vmem:[#allocation6 + $0x148] ss:$16 sps:$4 sm:$0xff]   ;;  %v1763_v37 = vld [vmem:[#allocation6 + $0x124] ss:$16 sps:$4 sm:$0xff]   ;;  %686 = vmatprep.subr.bf16.mxu1 %v1759_v34 }
  0x63   : > { %331 = vst [vmem:[#allocation2 + $0xc] sm:$0x7] %v330_v32  ;;  %v333_v38 = vsel %vm2206_vm2, %v314_v33, %v332_v26  ;;  %v1765_v39 = vld [vmem:[#allocation6 + $0x12c] ss:$16 sps:$4 sm:$0xff]   ;;  %v1767_v40 = vld [vmem:[#allocation6 + $0x120] ss:$16 sps:$4 sm:$0xff]   ;;  %687 = vmatpush1.bf16.msra.mxu1 %v1762_v36 }
  0x64   : > { %644 = vmatpush1.bf16.msra.mxu0 %v1761_v35  ;;  %334 = vst [vmem:[#allocation2 + $0x10] sm:$0x7] %v333_v38  ;;  %v1768_v41 = vld [vmem:[#allocation6 + $0x128] ss:$16 sps:$4 sm:$0xff]   ;;  %688 = vmatprep.subr.bf16.mxu1 %v1765_v39  ;;  %v1769_v43 = vld [vmem:[#allocation6 + $0x104] ss:$16 sps:$4 sm:$0xff]  }
  0x65   : > { %645 = vmatprep.subr.bf16.mxu0 %v1763_v37  ;;  %v2224_v45 = vld [vmem:[#allocation2] sm:$0x7]  ;;  %v1771_v46 = vld [vmem:[#allocation6 + $0x10c] ss:$16 sps:$4 sm:$0xff]   ;;  %v1773_v47 = vld [vmem:[#allocation6 + $0x100] ss:$16 sps:$4 sm:$0xff]  }
  0x66   : > { %v1774_v49 = vld [vmem:[#allocation6 + $0x108] ss:$16 sps:$4 sm:$0xff]   ;;  %v1775_v54 = vld [vmem:[#allocation6 + $0xe4] ss:$16 sps:$4 sm:$0xff]   ;;  %v1777_v55 = vld [vmem:[#allocation6 + $0xec] ss:$16 sps:$4 sm:$0xff]   ;;  %v1561_v2 = vcombine.low %v2224_v45, %v2224_v45 }
  0x67   : > { %v2220_v42 = vld [vmem:[#allocation2 + $0x8] sm:$0x7]  ;;  %689 = vmatpush1.bf16.msra.mxu1 %v1768_v41  ;;  %v2235_v60 = vld [vmem:[#allocation2 + $0x14] sm:$0x7]  ;;  %v1780_v3 = vld [vmem:[#allocation6 + $0xe8] ss:$16 sps:$4 sm:$0xff]   ;;  %v501_v41 = vlaneseq }
  0x68   : > { %v1563_v44 = vcombine.low %v2220_v42, %v2220_v42  ;;  %646 = vmatpush1.bf16.msra.mxu0 %v1767_v40  ;;  %690 = vmatprep.subr.bf16.mxu1 %v1771_v46  ;;  %v1779_v61 = vld [vmem:[#allocation6 + $0xe0] ss:$16 sps:$4 sm:$0xff]   ;;  %v1781_v8 = vld [vmem:[#allocation6 + $0xc4] ss:$16 sps:$4 sm:$0xff]   ;;  %v1783_v13 = vld [vmem:[#allocation6 + $0xcc] ss:$16 sps:$4 sm:$0xff]   ;;  %v1618_v14 = vcombine.low %v2235_v60, %v2235_v60 }
  0x69   : > { %v2226_v48 = vld [vmem:[#allocation2 + $0x4] sm:$0x7]  ;;  %647 = vmatprep.subr.bf16.mxu0 %v1769_v43  ;;  %v1785_v15 = vld [vmem:[#allocation6 + $0xc0] ss:$16 sps:$4 sm:$0xff]   ;;  %v1786_v16 = vld [vmem:[#allocation6 + $0xc8] ss:$16 sps:$4 sm:$0xff]  }
  0x6a   : > { %v391_v50 = vrot.slane %v1563_v44, 1  ;;  %v1562_v51 = vcombine.low %v2226_v48, %v2226_v48  ;;  %v370_v52 = vshll.u32 %v1563_v44, 16  ;;  %v2230_v53 = vld [vmem:[#allocation2 + $0xc] sm:$0x7]  ;;  %v368_v63 = vshrl.u32 %v1563_v44, 16  ;;  %s1556_s6 = sshll.u32 %s2175_s9, 5 }
  0x6b   : > { %v1564_v57 = vcombine.low %v2230_v53, %v2230_v53  ;;  %v2237_v62 = vld [vmem:[#allocation2 + $0x10] sm:$0x7]  ;;  %691 = vmatpush1.bf16.msra.mxu1 %v1774_v49  ;;  %v356_v20 = vshll.u32 %v1561_v2, 16  ;;  %v1789_v21 = vld [vmem:[#allocation6 + $0xa4] ss:$16 sps:$4 sm:$0xff]   ;;  %v354_v24 = vshrl.u32 %v1561_v2, 16 }
  0x6c   : > { %397 = vrot.lane.b32.xlu1 %v391_v50, %s2017_s21  ;;  %v390_v56 = vrot.slane %v1562_v51, 1  ;;  %v361_v58 = vshrl.u32 %v1562_v51, 16  ;;  %v363_v59 = vshll.u32 %v1562_v51, 16  ;;  %v372_v1 = vrot.slane %v370_v52, 1  ;;  %648 = vmatpush1.bf16.msra.mxu0 %v1773_v47  ;;  %v1792_v22 = vld [vmem:[#allocation6 + $0xac] ss:$16 sps:$4 sm:$0xff]  }
  0x6d   : > { %v375_v4 = vshrl.u32 %v1564_v57, 16  ;;  %v377_v5 = vshll.u32 %v1564_v57, 16  ;;  %v1565_v7 = vcombine.low %v2237_v62, %v2237_v62  ;;  %649 = vmatprep.subr.bf16.mxu0 %v1775_v54  ;;  %692 = vmatprep.subr.bf16.mxu1 %v1777_v55  ;;  %v392_v25 = vrot.slane %v1564_v57, 1  ;;  %s242_s7 = scalar_lea.vmem [#allocation9], %s1556_s6  ;;  %s1667_s25 = sshll.u32 %s2069_s19, 9 }
  0x6e   : > { %395 = vrot.lane.b32.xlu0 %v390_v56, %s2017_s21  ;;  %v365_v6 = vrot.slane %v363_v59, 1  ;;  %v373_v19 = vor.u32 %v372_v1, %v368_v63  ;;  %v358_v26 = vrot.slane %v356_v20, 1  ;;  %v956_v27 = vshll.u32 %v1618_v14, 16  ;;  %v1787_v1 = vld [vmem:[#allocation6 + $0xa0] ss:$16 sps:$4 sm:$0xff]   ;;  %s1452_s24 = sshll.u32 %s242_s7, 4  ;;  %s2326_s28 = scalar_lea.hbm %s2375_s4, %s1667_s25  ;;  %s2328_s24 = int_to_ptr.vmem [resolvable:$true] %s1452_s24 }
  0x6f   : > { %v379_v9 = vrot.slane %v377_v5, 1  ;;  %v451_v11 = vshrl.u32 %v1565_v7, 16  ;;  %v453_v12 = vshll.u32 %v1565_v7, 16  ;;  %693 = vmatpush1.bf16.msra.mxu1 %v1780_v3  ;;  %v459_v28 = vrot.slane %v1565_v7, 1  ;;  %v1795_v3 = vld [vmem:[#allocation6 + $0x84] ss:$16 sps:$4 sm:$0xff]  }
  0x70   : > { %v366_v10 = vor.u32 %v365_v6, %v361_v58  ;;  %650 = vmatpush1.bf16.msra.mxu0 %v1779_v61  ;;  %694 = vmatprep.subr.bf16.mxu1 %v1783_v13  ;;  %v359_v29 = vor.u32 %v358_v26, %v354_v24  ;;  %v954_v30 = vshrl.u32 %v1618_v14, 16  ;;  %v958_v31 = vrot.slane %v956_v27, 1  ;;  %v1793_v5 = vld [vmem:[#allocation6 + $0x80] ss:$16 sps:$4 sm:$0xff]   ;;  %v1796_v6 = vld [vmem:[#allocation6 + $0x88] ss:$16 sps:$4 sm:$0xff]  }
  0x71   : > { %v380_v17 = vor.u32 %v379_v9, %v375_v4  ;;  %v455_v18 = vrot.slane %v453_v12, 1  ;;  %651 = vmatprep.subr.bf16.mxu0 %v1781_v8  ;;  %v389_v32 = vrot.slane %v1561_v2, 1  ;;  %v962_v34 = vrot.slane %v1618_v14, 1  ;;  %v1790_v2 = vld [vmem:[#allocation6 + $0xa8] ss:$16 sps:$4 sm:$0xff]   ;;  %s1439_s19 = scalar_lea.sflag [#allocation5], %s2175_s9 }
  0x72   : > { %383 = vrot.lane.b32.xlu0 %v366_v10, %s2018_s23  ;;  %v959_v33 = vor.u32 %v958_v31, %v954_v30  ;;  %v2019_v39 = vmov 1983009808   ;;  %vm401_vm3 = vcmask 261120   ;;  %vm414_vm4 = vcmask 523264   ;;  %v1798_v4 = vld [vmem:[#allocation6 + $0x8c] ss:$16 sps:$4 sm:$0xff]  }
  0x73   : > { %387 = vrot.lane.b32.xlu1 %v380_v17, %s2018_s23  ;;  %v456_v23 = vor.u32 %v455_v18, %v451_v11  ;;  %695 = vmatpush1.bf16.msra.mxu1 %v1786_v16  ;;  %v499_v40 = vunpack.c.l.s4 %v2019_v39  ;;  %v2260_v50 = vshrl.u32 %v501_v41, 7  ;;  %vm633_vm5 = vcmask 785408   ;;  %v1801_v7 = vld [vmem:[#allocation6 + $0x64] ss:$16 sps:$4 sm:$0xff]   ;;  %v1804_v8 = vld [vmem:[#allocation6 + $0x6c] ss:$16 sps:$4 sm:$0xff]  }
  0x74   : > { %652 = vmatpush1.bf16.msra.mxu0 %v1785_v15  ;;  %911 = vmatprep.subr.bf16.mxu1 %v1792_v22  ;;  %v1799_v10 = vld [vmem:[#allocation6 + $0x60] ss:$16 sps:$4 sm:$0xff]   ;;  %v1802_v11 = vld [vmem:[#allocation6 + $0x68] ss:$16 sps:$4 sm:$0xff]   ;;  %v1807_v12 = vld [vmem:[#allocation6 + $0x44] ss:$16 sps:$4 sm:$0xff]  }
  0x75   : > { %868 = vmatprep.subr.bf16.mxu0 %v1789_v21  ;;  %v500_v49 = vunpack.c.0.s8 %v499_v40  ;;  %v1810_v13 = vld [vmem:[#allocation6 + $0x4c] ss:$16 sps:$4 sm:$0xff]   ;;  %v1805_v16 = vld [vmem:[#allocation6 + $0x40] ss:$16 sps:$4 sm:$0xff]   ;;  %v1808_v17 = vld [vmem:[#allocation6 + $0x48] ss:$16 sps:$4 sm:$0xff]  }
  0x76   : > { %385 = vrot.lane.b32.xlu0 %v373_v19, %s2018_s23  ;;  %v1813_v18 = vld [vmem:[#allocation6 + $0x24] ss:$16 sps:$4 sm:$0xff]   ;;  %v1816_v19 = vld [vmem:[#allocation6 + $0x2c] ss:$16 sps:$4 sm:$0xff]   ;;  %v1811_v21 = vld [vmem:[#allocation6 + $0x20] ss:$16 sps:$4 sm:$0xff]  }
  0x77   : > { %457 = vrot.lane.b32.xlu1 %v456_v23, %s2018_s23  ;;  %v2274_v57 = vsub.s32 %v500_v49, %v2260_v50  ;;  %v1814_v22 = vld [vmem:[#allocation6 + $0x28] ss:$16 sps:$4 sm:$0xff]   ;;  %v1819_v24 = vld [vmem:[#allocation6 + $0x4] ss:$16 sps:$4 sm:$0xff]   ;;  %v1817_v26 = vld [vmem:[#allocation6] ss:$16 sps:$4 sm:$0xff]  }
  0x78   : > { %v1820_v27 = vld [vmem:[#allocation6 + $0x8] ss:$16 sps:$4 sm:$0xff]   ;;  %v1828_v30 = vld [vmem:[#allocation6 + $0x22c] ss:$16 sps:$4 sm:$0xff]   ;;  %v1837_v39 = vld [vmem:[#allocation6 + $0x1e4] ss:$16 sps:$4 sm:$0xff]  }
  0x79   : > { %v1840_v40 = vld [vmem:[#allocation6 + $0x1ec] ss:$16 sps:$4 sm:$0xff]   ;;  %s1939_s30 = scalar_lea.vmem %s2328_s24, 512  ;;  %p2393_p10 = scmp.ne.s32.totalorder %s2385_s14, 0 }
  0x7a   : > { %399 = vrot.lane.b32.xlu0 %v392_v25, %s2017_s21  ;;  %p1940_p11 = scmp.ne.s32.totalorder %s2328_s24, %s1939_s30  ;;  %s2020_s8 = smov [#allocation9]  }
  0x7b   : > { %460 = vrot.lane.b32.xlu1 %v459_v28, %s2017_s21  ;;  %s1943_s10 = sshll.u32 %s2020_s8, 4  ;;  %s1944_s10 = int_to_ptr.vmem [resolvable:$false] %s1943_s10 }
  0x7c   : > { %p1941_p1 = pnand %p1940_p11, %p2393_p10  ;;  %s1945_s12 = scalar_lea.vmem %s1944_s10, 1024 }
  0x7d   : > { %p1946_p6 = scmp.lt.s32.totalorder %s2328_s24, %s1944_s10  ;;  %p1947_p12 = scmp.lt.s32.totalorder %s1945_s12, %s1939_s30 }
  0x7e   : > { %381 = vrot.lane.b32.xlu0 %v359_v29, %s2018_s23  ;;  %v1825_v29 = vld [vmem:[#allocation6 + $0x224] ss:$16 sps:$4 sm:$0xff]   ;;  %p1942_p2 = pneg %p1941_p1 }
  0x7f   : > { %393 = vrot.lane.b32.xlu1 %v389_v32, %s2017_s21  ;;  %v1823_v32 = vld [vmem:[#allocation6 + $0x220] ss:$16 sps:$4 sm:$0xff]   ;;  %p1948_p7 = por %p1947_p12, %p1946_p6 }
  0x81   : > { %p1949_p9 = pnand %p1948_p7, %p1942_p2 }
  0x82   : > { %960 = vrot.lane.b32.xlu0 %v959_v33, %s2018_s23  ;;  %v1826_v33 = vld [vmem:[#allocation6 + $0x228] ss:$16 sps:$4 sm:$0xff]  }
  0x83   : > { %963 = vrot.lane.b32.xlu1 %v962_v34, %s2017_s21 }
  0xde   : > { %v398_v35 = vpop.permute.xlu1 %397 }
  0xe0   : > { %v396_v36 = vpop.permute.xlu0 %395 }
  0xe4   : > { %v384_v37 = vpop.permute.xlu0 %383 }
  0xe5   : > { %v388_v38 = vpop.permute.xlu1 %387  ;;  %v407_v46 = vsel %vm401_vm3, %v2226_v48, %v384_v37  ;;  %v1829_v37 = vld [vmem:[#allocation6 + $0x200] ss:$16 sps:$4 sm:$0xff]  }
  0xe6   : > { %v413_v52 = vsel %vm401_vm3, %v2230_v53, %v388_v38  ;;  %v1832_v38 = vld [vmem:[#allocation6 + $0x208] ss:$16 sps:$4 sm:$0xff]  }
  0xe8   : > { %v386_v43 = vpop.permute.xlu0 %385 }
  0xe9   : > { %v410_v44 = vsel %vm401_vm3, %v2220_v42, %v386_v43  ;;  %v458_v47 = vpop.permute.xlu1 %457  ;;  %v418_v42 = vsel %vm414_vm4, %v407_v46, %v396_v36  ;;  %v1834_v36 = vld [vmem:[#allocation6 + $0x20c] ss:$16 sps:$4 sm:$0xff]   ;;  %v1835_v43 = vld [vmem:[#allocation6 + $0x1e0] ss:$16 sps:$4 sm:$0xff]   ;;  %v1843_v46 = vld [vmem:[#allocation6 + $0x1c4] ss:$16 sps:$4 sm:$0xff]  }
  0xea   : > { %v2263_v51 = vsel %vm414_vm4, %v410_v44, %v398_v35  ;;  %v464_v48 = vsel %vm401_vm3, %v2237_v62, %v458_v47  ;;  %v1831_v35 = vld [vmem:[#allocation6 + $0x204] ss:$16 sps:$4 sm:$0xff]   ;;  %v1838_v44 = vld [vmem:[#allocation6 + $0x1e8] ss:$16 sps:$4 sm:$0xff]   ;;  %v1846_v47 = vld [vmem:[#allocation6 + $0x1cc] ss:$16 sps:$4 sm:$0xff]  }
  0xeb   : > { %v496_v58 = vcombine.low %v418_v42, %v2263_v51 }
  0xec   : > { %v400_v54 = vpop.permute.xlu0 %399 }
  0xed   : > { %v2268_v55 = vsel %vm414_vm4, %v413_v52, %v400_v54  ;;  %v461_v56 = vpop.permute.xlu1 %460  ;;  %v504_v63 = vrot.slane %v496_v58, %v2274_v57  ;;  %v1841_v52 = vld [vmem:[#allocation6 + $0x1c0] ss:$16 sps:$4 sm:$0xff]   ;;  %v1844_v54 = vld [vmem:[#allocation6 + $0x1c8] ss:$16 sps:$4 sm:$0xff]  }
  0xee   : > { %v2278_v59 = vsel %vm414_vm4, %v464_v48, %v461_v56  ;;  %v725_v25 = vcombine.low %v2263_v51, %v2268_v55  ;;  %v1847_v48 = vld [vmem:[#allocation6 + $0x1a0] ss:$16 sps:$4 sm:$0xff]   ;;  %v1850_v56 = vld [vmem:[#allocation6 + $0x1a8] ss:$16 sps:$4 sm:$0xff]  }
  0xef   : > { %v497_v53 = vcombine.low %v2268_v55, %v2278_v59  ;;  %v1852_v55 = vld [vmem:[#allocation6 + $0x1ac] ss:$16 sps:$4 sm:$0xff]  }
  0xf0   : > { %v382_v9 = vpop.permute.xlu0 %381  ;;  %v739_v31 = vrot.slane %v725_v25, %v2274_v57 }
  0xf1   : > { %v511_v61 = vrot.slane %v497_v53, %v2274_v57  ;;  %v404_v14 = vsel %vm401_vm3, %v2224_v45, %v382_v9  ;;  %v394_v15 = vpop.permute.xlu1 %393  ;;  %v1822_v45 = vld [vmem:[#allocation6 + $0xc] ss:$16 sps:$4 sm:$0xff]  }
  0xf2   : > { %v416_v20 = vsel %vm414_vm4, %v404_v14, %v394_v15  ;;  %v1858_v53 = vld [vmem:[#allocation6 + $0x18c] ss:$16 sps:$4 sm:$0xff]   ;;  %v1226_v15 = vsub.s32 0, %v2260_v50 }
  0xf3   : > { %v512_v62 = vcombine.low %v504_v63, %v511_v61  ;;  %v724_v23 = vcombine.low %v416_v20, %v418_v42  ;;  %v1853_v61 = vld [vmem:[#allocation6 + $0x180] ss:$16 sps:$4 sm:$0xff]   ;;  %v1856_v63 = vld [vmem:[#allocation6 + $0x188] ss:$16 sps:$4 sm:$0xff]  }
  0xf4   : > { %v961_v41 = vpop.permute.xlu0 %960  ;;  %v1252_v20 = vld [vmem:[%s2374_s3] sm:$0xf] }
  0xf5   : > { %1590 = vmatmul.mubr.msk.bf16.vlgmr.msra.gmra.mxu0 %vm633_vm5, %v512_v62  ;;  %1591 = vmatmul.mubr.msk.bf16.vlgmr.msra.gmra.mxu1 %vm633_vm5, %v512_v62  ;;  %v732_v28 = vrot.slane %v724_v23, %v2274_v57  ;;  %v967_v49 = vsel %vm401_vm3, %v2235_v60, %v961_v41  ;;  %v964_v51 = vpop.permute.xlu1 %963  ;;  %v1855_v60 = vld [vmem:[#allocation6 + $0x184] ss:$16 sps:$4 sm:$0xff]  }
  0xf6   : > { %869 = vmatpush1.bf16.msra.mxu0 %v1787_v1  ;;  %912 = vmatpush1.bf16.msra.mxu1 %v1790_v2  ;;  %v969_v42 = vsel %vm414_vm4, %v967_v49, %v964_v51 }
  0xf7   : > { %870 = vmatprep.subr.bf16.mxu0 %v1795_v3  ;;  %913 = vmatprep.subr.bf16.mxu1 %v1798_v4  ;;  %v740_v34 = vcombine.low %v732_v28, %v739_v31  ;;  %v996_v58 = vcombine.low %v2278_v59, %v969_v42 }
  0xf8   : > { %896 = vmatprep.mubr.bf16.mxu0 %v2016_v0  ;;  %939 = vmatprep.mubr.bf16.mxu1 %v2016_v0 }
  0xf9   : > { %v1003_v1 = vrot.slane %v996_v58, %v2274_v57 }
  0xfa   : > { %871 = vmatpush1.bf16.msra.mxu0 %v1793_v5  ;;  %914 = vmatpush1.bf16.msra.mxu1 %v1796_v6 }
  0xfb   : > { %872 = vmatprep.subr.bf16.mxu0 %v1801_v7  ;;  %915 = vmatprep.subr.bf16.mxu1 %v1804_v8  ;;  %v1004_v2 = vcombine.low %v739_v31, %v1003_v1 }
  0xfe   : > { %873 = vmatpush1.bf16.msra.mxu0 %v1799_v10  ;;  %916 = vmatpush1.bf16.msra.mxu1 %v1802_v11 }
  0xff   : > { %874 = vmatprep.subr.bf16.mxu0 %v1807_v12  ;;  %917 = vmatprep.subr.bf16.mxu1 %v1810_v13 }
 0x102   : > { %875 = vmatpush1.bf16.msra.mxu0 %v1805_v16  ;;  %918 = vmatpush1.bf16.msra.mxu1 %v1808_v17  ;;  %v1234_v16 = vsub.s32 2, %v2260_v50  ;;  %v1222_v17 = vld [vmem:[#allocation8] sm:$0xf] }
 0x103   : > { %876 = vmatprep.subr.bf16.mxu0 %v1813_v18  ;;  %919 = vmatprep.subr.bf16.mxu1 %v1816_v19  ;;  %v1230_v18 = vsub.s32 1, %v2260_v50  ;;  %v1238_v19 = vsub.s32 3, %v2260_v50 }
 0x104   : > { %v1235_v25 = vrot.slane %v1222_v17, %v1234_v16  ;;  %v1265_v50 = vrot.slane %v1252_v20, %v1234_v16 }
 0x106   : > { %877 = vmatpush1.bf16.msra.mxu0 %v1811_v21  ;;  %920 = vmatpush1.bf16.msra.mxu1 %v1814_v22 }
 0x107   : > { %878 = vmatprep.subr.bf16.mxu0 %v1819_v24  ;;  %921 = vmatprep.subr.bf16.mxu1 %v1822_v45  ;;  %v1227_v45 = vrot.slane %v1222_v17, %v1226_v15 }
 0x10a   : > { %879 = vmatpush1.bf16.msra.mxu0 %v1817_v26  ;;  %922 = vmatpush1.bf16.msra.mxu1 %v1820_v27  ;;  %v1257_v27 = vrot.slane %v1252_v20, %v1226_v15 }
 0x10b   : > { %1132 = vmatprep.subr.bf16.mxu0 %v1825_v29  ;;  %1175 = vmatprep.subr.bf16.mxu1 %v1828_v30  ;;  %v1231_v29 = vrot.slane %v1222_v17, %v1230_v18  ;;  %v1239_v30 = vrot.slane %v1222_v17, %v1238_v19 }
 0x10d   : > { %1616 = vmatmul.mubr.msk.bf16.vlgmr.msra.gmra.mxu0 %vm633_vm5, %v740_v34  ;;  %1617 = vmatmul.mubr.msk.bf16.vlgmr.msra.gmra.mxu1 %vm633_vm5, %v740_v34 }
 0x10e   : > { %1133 = vmatpush1.bf16.msra.mxu0 %v1823_v32  ;;  %1176 = vmatpush1.bf16.msra.mxu1 %v1826_v33 }
 0x10f   : > { %1134 = vmatprep.subr.bf16.mxu0 %v1831_v35  ;;  %1177 = vmatprep.subr.bf16.mxu1 %v1834_v36  ;;  %v1261_v36 = vrot.slane %v1252_v20, %v1230_v18 }
 0x110   : > { %1160 = vmatprep.mubr.bf16.mxu0 %v2016_v0  ;;  %1203 = vmatprep.mubr.bf16.mxu1 %v2016_v0  ;;  %v1849_v0 = vld [vmem:[#allocation6 + $0x1a4] ss:$16 sps:$4 sm:$0xff]  }
 0x112   : > { %1135 = vmatpush1.bf16.msra.mxu0 %v1829_v37  ;;  %1178 = vmatpush1.bf16.msra.mxu1 %v1832_v38  ;;  %v1269_v38 = vrot.slane %v1252_v20, %v1238_v19 }
 0x113   : > { %1136 = vmatprep.subr.bf16.mxu0 %v1837_v39  ;;  %1179 = vmatprep.subr.bf16.mxu1 %v1840_v40 }
 0x116   : > { %1137 = vmatpush1.bf16.msra.mxu0 %v1835_v43  ;;  %1180 = vmatpush1.bf16.msra.mxu1 %v1838_v44 }
 0x117   : > { %1138 = vmatprep.subr.bf16.mxu0 %v1843_v46  ;;  %1181 = vmatprep.subr.bf16.mxu1 %v1846_v47 }
 0x11a   : > { %1139 = vmatpush1.bf16.msra.mxu0 %v1841_v52  ;;  %1182 = vmatpush1.bf16.msra.mxu1 %v1844_v54 }
 0x11b   : > { %1140 = vmatprep.subr.bf16.mxu0 %v1849_v0  ;;  %1183 = vmatprep.subr.bf16.mxu1 %v1852_v55 }
 0x11e   : > { %1141 = vmatpush1.bf16.msra.mxu0 %v1847_v48  ;;  %1184 = vmatpush1.bf16.msra.mxu1 %v1850_v56 }
 0x11f   : > { %1142 = vmatprep.subr.bf16.mxu0 %v1855_v60  ;;  %1185 = vmatprep.subr.bf16.mxu1 %v1858_v53 }
 0x122   : > { %1143 = vmatpush1.bf16.msra.mxu0 %v1853_v61  ;;  %1186 = vmatpush1.bf16.msra.mxu1 %v1856_v63 }
 0x125   : > { %1643 = vmatmul.mubr.msk.bf16.vlgmr.msra.gmra.mxu0 %vm633_vm5, %v1004_v2  ;;  %1644 = vmatmul.mubr.msk.bf16.vlgmr.msra.gmra.mxu1 %vm633_vm5, %v1004_v2 }
 0x1b5   : > { %v671_v59 = vpop.f32.mrf.mxu0  ;;  %v714_v62 = vpop.f32.mrf.mxu1 }
 0x1b7   : > { %v673_v3 = vpop.f32.mrf.mxu0  ;;  %v716_v4 = vpop.f32.mrf.mxu1 }
 0x1b9   : > { %v675_v5 = vpop.f32.mrf.mxu0  ;;  %v718_v6 = vpop.f32.mrf.mxu1 }
 0x1bb   : > { %v677_v7 = vpop.f32.mrf.mxu0  ;;  %v720_v8 = vpop.f32.mrf.mxu1 }
 0x1cd   : > { %v898_v9 = vpop.f32.mrf.mxu0  ;;  %v941_v10 = vpop.f32.mrf.mxu1 }
 0x1ce   : > { %v899_v23 = vadd.f32 %v898_v9, %v671_v59  ;;  %v942_v24 = vadd.f32 %v941_v10, %v714_v62 }
 0x1cf   : > { %v900_v11 = vpop.f32.mrf.mxu0  ;;  %v943_v12 = vpop.f32.mrf.mxu1 }
 0x1d0   : > { %v901_v31 = vadd.f32 %v900_v11, %v673_v3  ;;  %v944_v32 = vadd.f32 %v943_v12, %v716_v4 }
 0x1d1   : > { %v902_v13 = vpop.f32.mrf.mxu0  ;;  %v945_v14 = vpop.f32.mrf.mxu1 }
 0x1d2   : > { %v903_v44 = vadd.f32 %v902_v13, %v675_v5  ;;  %v946_v46 = vadd.f32 %v945_v14, %v718_v6 }
 0x1d3   : > { %v904_v21 = vpop.f32.mrf.mxu0  ;;  %v947_v22 = vpop.f32.mrf.mxu1 }
 0x1d4   : > { %v905_v51 = vadd.f32 %v904_v21, %v677_v7  ;;  %v948_v55 = vadd.f32 %v947_v22, %v720_v8 }
 0x1e5   : > { %v1162_v26 = vpop.f32.mrf.mxu0  ;;  %v1205_v28 = vpop.f32.mrf.mxu1 }
 0x1e6   : > { %v1214_v33 = vadd.f32 %v1162_v26, %v899_v23  ;;  %v1216_v34 = vadd.f32 %v1205_v28, %v942_v24 }
 0x1e7   : > { %v1164_v35 = vpop.f32.mrf.mxu0  ;;  %v1207_v37 = vpop.f32.mrf.mxu1 }
 0x1e8   : > { %v1244_v39 = vmul.f32 %v1227_v45, %v1214_v33  ;;  %v1246_v40 = vmul.f32 %v1235_v25, %v1216_v34  ;;  %v1215_v41 = vadd.f32 %v1164_v35, %v901_v31  ;;  %v1217_v43 = vadd.f32 %v1207_v37, %v944_v32 }
 0x1e9   : > { %v1166_v47 = vpop.f32.mrf.mxu0  ;;  %v1209_v49 = vpop.f32.mrf.mxu1 }
 0x1ea   : > { %v1274_v52 = vadd.f32 %v1257_v27, %v1244_v39  ;;  %v1245_v54 = vmul.f32 %v1231_v29, %v1215_v41  ;;  %v1247_v0 = vmul.f32 %v1239_v30, %v1217_v43  ;;  %v1276_v42 = vadd.f32 %v1265_v50, %v1246_v40 }
 0x1eb   : > { %v1218_v48 = vadd.f32 %v1166_v47, %v903_v44  ;;  %v1220_v56 = vadd.f32 %v1209_v49, %v946_v46  ;;  %v1168_v58 = vpop.f32.mrf.mxu0  ;;  %v1211_v60 = vpop.f32.mrf.mxu1 }
 0x1ec   : > { %v1275_v53 = vadd.f32 %v1261_v36, %v1245_v54  ;;  %v1277_v61 = vadd.f32 %v1269_v38, %v1247_v0  ;;  %v1219_v1 = vadd.f32 %v1168_v58, %v905_v51  ;;  %v1221_v2 = vadd.f32 %v1211_v60, %v948_v55 }
 0x1ed   : > { %v1248_v63 = vmul.f32 %v1227_v45, %v1218_v48  ;;  %v1282_v59 = vmax.f32 %v1274_v52, 0.0  ;;  %v1250_v4 = vmul.f32 %v1235_v25, %v1220_v56  ;;  %v1284_v5 = vmax.f32 %v1276_v42, 0.0 }
 0x1ee   : > { %v1283_v62 = vmax.f32 %v1275_v53, 0.0  ;;  %v1285_v3 = vmax.f32 %v1277_v61, 0.0  ;;  %v1249_v7 = vmul.f32 %v1231_v29, %v1219_v1  ;;  %v1251_v9 = vmul.f32 %v1239_v30, %v1221_v2 }
 0x1ef   : > { %v1278_v6 = vadd.f32 %v1257_v27, %v1248_v63  ;;  %v1280_v19 = vadd.f32 %v1265_v50, %v1250_v4 }
 0x1f0   : > { %v1298_v8 = vcombine.low %v1282_v59, %v1283_v62  ;;  %v1299_v10 = vcombine.high %v1282_v59, %v1283_v62  ;;  %v1645_v11 = vcombine.low %v1283_v62, %v1283_v62  ;;  %v1647_v12 = vcombine.high %v1283_v62, %v1283_v62 }
 0x1f1   : > { %v1300_v13 = vcombine.low %v1284_v5, %v1285_v3  ;;  %v1301_v14 = vcombine.high %v1284_v5, %v1285_v3  ;;  %v1646_v15 = vcombine.low %v1285_v3, %v1285_v3  ;;  %v1648_v16 = vcombine.high %v1285_v3, %v1285_v3 }
 0x1f2   : > { %v1653_v17 = vpack.c.bf16 %v1645_v11, %v1298_v8  ;;  %v1655_v18 = vpack.c.bf16 %v1647_v12, %v1299_v10  ;;  %v1279_v22 = vadd.f32 %v1261_v36, %v1249_v7  ;;  %v1281_v23 = vadd.f32 %v1269_v38, %v1251_v9 }
 0x1f3   : > { %v1654_v20 = vpack.c.bf16 %v1646_v15, %v1300_v13  ;;  %v1656_v21 = vpack.c.bf16 %v1648_v16, %v1301_v14  ;;  %v1286_v25 = vmax.f32 %v1278_v6, 0.0  ;;  %v1288_v30 = vmax.f32 %v1280_v19, 0.0 }
 0x1f4   : > { %v1370_v24 = vrot.slane %v1653_v17, %v2274_v57  ;;  %v1387_v45 = vrot.slane %v1655_v18, %v2274_v57  ;;  %v1287_v28 = vmax.f32 %v1279_v22, 0.0  ;;  %v1289_v29 = vmax.f32 %v1281_v23, 0.0 }
 0x1f5   : > { %v1377_v26 = vrot.slane %v1654_v20, %v2274_v57  ;;  %v1394_v27 = vrot.slane %v1656_v21, %v2274_v57 }
 0x1f6   : > { %v1302_v33 = vcombine.low %v1286_v25, %v1287_v28  ;;  %v1303_v34 = vcombine.high %v1286_v25, %v1287_v28  ;;  %v1649_v50 = vcombine.low %v1287_v28, %v1287_v28  ;;  %v1651_v35 = vcombine.high %v1287_v28, %v1287_v28 }
 0x1f7   : > { %v1378_v31 = vcombine.low %v1370_v24, %v1377_v26  ;;  %v1395_v32 = vcombine.low %v1387_v45, %v1394_v27  ;;  %v1304_v36 = vcombine.low %v1288_v30, %v1289_v29  ;;  %v1305_v37 = vcombine.high %v1288_v30, %v1289_v29 }
 0x1f8   : > { %v1650_v38 = vcombine.low %v1289_v29, %v1289_v29  ;;  %v1652_v39 = vcombine.high %v1289_v29, %v1289_v29  ;;  %v1657_v40 = vpack.c.bf16 %v1649_v50, %v1302_v33  ;;  %v1659_v41 = vpack.c.bf16 %v1651_v35, %v1303_v34 }
 0x1f9   : > { %1434 = vst [vmem:[%s242_s7] sm:$0xff] %v1378_v31  ;;  %1435 = vst [vmem:[%s242_s7 + $0x8] sm:$0xff] %v1395_v32 }
 0x1fa   : > { %v1658_v43 = vpack.c.bf16 %v1650_v38, %v1304_v36  ;;  %v1660_v44 = vpack.c.bf16 %v1652_v39, %v1305_v37  ;;  %v1404_v46 = vrot.slane %v1657_v40, %v2274_v57  ;;  %v1421_v47 = vrot.slane %v1659_v41, %v2274_v57 }
 0x1fc   : > { %v1411_v49 = vrot.slane %v1658_v43, %v2274_v57  ;;  %v1428_v51 = vrot.slane %v1660_v44, %v2274_v57 }
 0x1fe   : > { %v1412_v52 = vcombine.low %v1404_v46, %v1411_v49  ;;  %v1429_v54 = vcombine.low %v1421_v47, %v1428_v51 }
 0x200   : > { %1436 = vst [vmem:[%s242_s7 + $0x10] sm:$0xff] %v1412_v52  ;;  %1437 = vst [vmem:[%s242_s7 + $0x18] sm:$0xff] %v1429_v54 }
 0x201   : > { %1952 = shalt.err (!%p1949_p9)
}
 0x202   : > { %s1953_s13 = scalar_lea.hbm %s2326_s28, 512  ;;  %s1957_s29 = scalar_lea.hbm %s2375_s4, 1024 }
 0x203   : > { %p1954_p13 = scmp.ne.s32.totalorder %s2326_s28, %s1953_s13  ;;  %p1958_p4 = scmp.lt.s32.totalorder %s2326_s28, %s2375_s4 }
 0x204   : > { %p1959_p8 = scmp.lt.s32.totalorder %s1957_s29, %s1953_s13 }
 0x205   : > { %p1955_p5 = pnand %p1954_p13, %p2393_p10 }
 0x206   : > { %p1960_p3 = por %p1959_p8, %p1958_p4 }
 0x207   : > { %p1956_p0 = pneg %p1955_p5 }
 0x209   : > { %p1961_p11 = pnand %p1960_p3, %p1956_p0 }
 0x20b   : > { %1964 = shalt.err (!%p1961_p11)
}
 0x20c   : > { %s2021_s7 = smov 128   ;;  %s2022_s25 = smov 8  }
 0x20d   : > { %1678 = dma.vmem_to_hbm [thread:$0]  (%p2393_p10), %s2328_s24, 512, %s2326_s28, %s1439_s19, %s2021_s7, %s2021_s7, %s2022_s25  }
 0x20e PF: > { %s1467_s26 = sand.u32 1, %s1995_s15   ;;  %p2394_p1 = scmp.ne.s32.totalorder %s2381_s22, 0 }
 0x20f   : > { %p2395_p2 = scmp.ge.s32.totalorder %s2007_s18, 2  ;;  %s1468_s27 = scalar_lea.sflag [#allocation5], %s1467_s26 }
 0x211   : > { %p1692_p6 = pnand %p2395_p2, %p2394_p1 }
 0x213   : > { %p1693_p12 = pneg %p1692_p6 }
 0x215   : > { %1990 = dma.done.wait (%p1693_p12), %s1468_s27, 512  }
 0x216   : > { %1992 = vsyncadd (%p1693_p12), %s1468_s27, 4294966784  ;;  %p18_p7 = scmp.ge.s32.totalorder %s2120_s11, 4   ;;  %s2396_s15 = smov %s1999_s16 }
 0x217   : > { %s2397_s16 = smov %s2003_s17  ;;  %s2398_s17 = smov %s2136_s20 }
 0x218   : > { %s2399_s18 = smov %s2120_s11  ;;  %20 = sbr.rel (!%p18_p7) target bundleno = 6 (0x6), region = 92 }
 0x21d   :  { %1473 = vsyncpa [#allocation4], 1 }
 0x21e   :  { %1475 = vsyncpa [#allocation4 + $0x1], 1 }
 0x21f   :  { %1476 = vsyncpa [#allocation7], 1 }
 0x220   :  { %1477 = vsyncpa [#allocation5], 1 }
 0x221   :  { %1479 = vsyncpa [#allocation5 + $0x1], 1 }

</bundles_post_ra>
